<compile_context>
chip_gen: v5e
topology: v5e:2x2
jax: 0.10.0
libtpu: 0.0.40
codegen_flags: <defaults>
</compile_context>

<pallas_src>
import numpy as np

import jax
import jax.numpy as jnp
from jax import lax
from jax.experimental import pallas as pl
from jax.experimental.pallas import tpu as pltpu


def _make_kernel(*, K, pad, Cout, Cin, Bblk, H, W, mode, has_weight):
    """Build the per-grid-step kernel body.

    Ref layout (all tensors blocked along batch only):
      pooled_ref: (Bblk, Cin,  H+2p, W+2p)  VMEM  pre-padded pooled target (p=0 for identity)
      x_ref     : (Bblk, Cout, H, W)        VMEM
      w_ref     : (Bblk, Cout, H, W)        VMEM  (only if has_weight)
      taps      : SMEM scalars (dense: K*K per (co,ci) slab; separable: K + K)
      out_ref   : (1, 1, 128)               VMEM  lane-dense per-block partial sum
    """

    def kernel(*refs):
        it = iter(refs)
        pooled_ref = next(it)
        x_ref = next(it)
        w_ref = next(it) if has_weight else None
        k_ref = u_ref = v_ref = None
        if mode == "dense":
            k_ref = next(it)
        elif mode == "separable":
            u_ref = next(it)
            v_ref = next(it)
        out_ref = next(it)

        # (H, W) vector accumulator across batch elements and output channels of the
        # block; a single cross-lane reduction at the end.
        acc = jnp.zeros((H, W), jnp.float32)
        # TODO(synk): if Cout/Cin ever get large (>=128), reformulate the per-tap
        # channel mixing as an (H*W, Cin) x (Cin, Cout) jnp.dot on the MXU.
        for b in range(Bblk):          # static unroll; Bblk is capped in the wrapper
            for co in range(Cout):
                if mode == "identity":
                    # kernel is None: conv skipped entirely (no padding, no taps).
                    conv = pooled_ref[b, co]
                elif mode == "separable":
                    # Rank-1 (Gaussian) kernel: K-tap horizontal pass over the padded
                    # row band, then K-tap vertical pass -> 2K MACs/elem vs K^2.
                    conv = jnp.zeros((H, W), jnp.float32)
                    for ci in range(Cin):
                        base = (co * Cin + ci) * K
                        hp = jnp.zeros((H + 2 * pad, W), jnp.float32)
                        for kw in range(K):
                            hp = hp + pooled_ref[b, ci, :, kw:kw + W] * v_ref[base + kw]
                        for kh in range(K):
                            conv = conv + hp[kh:kh + H, :] * u_ref[base + kh]
                else:  # dense K*K fallback for arbitrary (non rank-1) kernels
                    conv = jnp.zeros((H, W), jnp.float32)
                    for ci in range(Cin):
                        base = (co * Cin + ci) * K * K
                        for kh in range(K):
                            for kw in range(K):
                                kval = k_ref[base + kh * K + kw]
                                conv = conv + pooled_ref[b, ci, kh:kh + H, kw:kw + W] * kval
                d = x_ref[b, co] - conv
                if has_weight:
                    d = d * w_ref[b, co]
                acc = acc + d * d

        # One cross-lane reduction per grid step, broadcast into a lane-dense row.
        out_ref[...] = jnp.broadcast_to(jnp.sum(acc), (1, 1, 128))

    return kernel


def _try_separable(kernel_arr, tol=1e-5):
    """Per-(co,ci) rank-1 factorization of the conv kernel (e.g. a Gaussian).

    Returns flattened (u, v) taps with slab[kh, kw] == u[kh] * v[kw], or None if any
    slab is not numerically rank-1 or the kernel is a tracer (e.g. under jit).
    """
    try:
        k = np.asarray(jax.device_get(kernel_arr), dtype=np.float64)
    except Exception:
        return None
    Cout, Cin, K, _ = k.shape
    u = np.zeros((Cout, Cin, K), np.float64)
    v = np.zeros((Cout, Cin, K), np.float64)
    for co in range(Cout):
        for ci in range(Cin):
            slab = k[co, ci]
            U, S, Vt = np.linalg.svd(slab)
            approx = S[0] * np.outer(U[:, 0], Vt[0])
            scale = max(1.0, float(np.abs(slab).max()))
            if not np.allclose(approx, slab, rtol=0.0, atol=tol * scale):
                return None
            u[co, ci] = S[0] * U[:, 0]
            v[co, ci] = Vt[0]
    return (jnp.asarray(u.reshape(-1), jnp.float32),
            jnp.asarray(v.reshape(-1), jnp.float32))


def weighted_gaussian_mse(x, target, kernel=None, weight=None):
    """JAX/Pallas equivalent of WeightedGaussianMSE.forward."""
    x = x.astype(jnp.float32)
    target = target.astype(jnp.float32)
    B, C, H, W = x.shape
    Bt, Ct, Ht, Wt = target.shape
    assert Bt == B
    # adaptive_max_pool2d supported for integer down-sampling ratios only
    # (exactly max_pool2d(kernel=stride=ratio) in that case).
    # TODO(synk): non-integer adaptive pooling ratios are not handled.
    assert Ht % H == 0 and Wt % W == 0
    rh, rw = Ht // H, Wt // W

    # Adaptive max-pool in the wrapper: only the pooled (1/(rh*rw)-sized) map is
    # streamed into the kernel.
    # TODO(synk): on v7x (HBM-bound) fuse this max-pool into the kernel by DMAing raw
    # target tiles and reducing on the VPU, dropping the pooled HBM write+read.
    pooled = lax.reduce_window(target, -jnp.inf, lax.max,
                               (1, 1, rh, rw), (1, 1, rh, rw), "VALID")

    has_weight = weight is not None
    if has_weight:
        # TODO(synk): for broadcastable weights (e.g. (B,1,H,W)) pass the small array
        # and broadcast via BlockSpec index_map / in-kernel instead of materializing.
        weight = jnp.broadcast_to(weight, x.shape).astype(jnp.float32)

    if kernel is None:
        # conv is skipped in the reference -> identity path: no padding, no taps.
        assert Ct == C
        mode, K, pad, Cout, Cin = "identity", 1, 0, C, C
        pooled_in, tap_inputs = pooled, ()
    else:
        kernel = kernel.astype(jnp.float32)
        Cout, Cin, K, Kw = kernel.shape
        assert K == Kw and Cin == Ct and Cout == C and K % 2 == 1
        pad = (K - 1) // 2
        # Zero-pad the small pooled map once, wrapper-side: the kernel reads conv taps
        # straight from the padded block (no per-step scratch zeroing / interior copy,
        # and the block DMA store stays lane-aligned).
        pooled_in = jnp.pad(pooled, ((0, 0), (0, 0), (pad, pad), (pad, pad)))
        sep = _try_separable(kernel)
        if sep is not None:
            mode, tap_inputs = "separable", sep                  # 2K taps per slab
        else:
            mode, tap_inputs = "dense", (kernel.reshape(-1),)    # K*K fallback

    Hp, Wp = H + 2 * pad, W + 2 * pad

    # ---- choose how many batch elements to fuse per grid step -------------------
    # Keep the double-buffered input blocks within a few MiB (safe vs v7x's 64 MiB
    # VMEM), bound trace-time unrolling, and prefer an even grid length so
    # ("parallel",) load-balances the two v7x TensorCores.
    per_elem_bytes = 4 * (Cin * Hp * Wp + (2 if has_weight else 1) * C * H * W)
    taps_per_elem = {"identity": 1, "separable": 2 * K, "dense": K * K}[mode]
    budget_bytes = 4 << 20
    max_unrolled_taps = 4096
    bblk = max(1, min(B,
                      budget_bytes // max(per_elem_bytes, 1),
                      max_unrolled_taps // max(Cout * Cin * taps_per_elem, 1)))
    while B % bblk:
        bblk -= 1
    if B > 1:
        while (B // bblk) % 2 and bblk > 1:      # prefer an even grid (v7x megacore)
            bblk -= 1
            while B % bblk:
                bblk -= 1
    G = B // bblk

    # ---- pallas_call -------------------------------------------------------------
    in_specs = [
        pl.BlockSpec((bblk, Cin, Hp, Wp), lambda g: (g, 0, 0, 0)),   # padded pooled target
        pl.BlockSpec((bblk, C, H, W), lambda g: (g, 0, 0, 0)),       # x
    ]
    inputs = [pooled_in, x]
    if has_weight:
        in_specs.append(pl.BlockSpec((bblk, C, H, W), lambda g: (g, 0, 0, 0)))
        inputs.append(weight)
    for taps in tap_inputs:
        in_specs.append(pl.BlockSpec(memory_space=pltpu.MemorySpace.SMEM))  # scalar taps
        inputs.append(taps)

    # TODO(synk): when production W is small (<128 lanes), repack batch elements /
    # rows along the lane axis with per-segment (W+2*pad) padding for lane-dense VPU
    # work; skipped here for generality.
    partials = pl.pallas_call(
        _make_kernel(K=K, pad=pad, Cout=Cout, Cin=Cin, Bblk=bblk, H=H, W=W,
                     mode=mode, has_weight=has_weight),
        out_shape=jax.ShapeDtypeStruct((G, 1, 128), jnp.float32),
        grid=(G,),
        in_specs=in_specs,
        out_specs=pl.BlockSpec((1, 1, 128), lambda g: (g, 0, 0)),   # per-step partial sums
        compiler_params=pltpu.CompilerParams(
            dimension_semantics=("parallel",),      # megacore split on v7x
            # blocks are budgeted to <=4 MiB, so 32 MiB comfortably covers the
            # double-buffered pipeline on every generation (incl. v7x's 64 MiB VMEM).
            vmem_limit_bytes=32 * 1024 * 1024),
    )(*inputs)

    return jnp.sum(partials[:, 0, 0]) / (B * C * H * W)


def _reference_loss(x, target, kernel, weight):
    """Pure-JAX reference mirroring the PyTorch module (for verification)."""
    B, C, H, W = x.shape
    Ht, Wt = target.shape[2:]
    rh, rw = Ht // H, Wt // W
    pooled = lax.reduce_window(target.astype(jnp.float32), -jnp.inf, lax.max,
                               (1, 1, rh, rw), (1, 1, rh, rw), "VALID")
    if kernel is not None:
        pad = (kernel.shape[-1] - 1) // 2
        pooled = lax.conv_general_dilated(
            pooled, kernel.astype(jnp.float32), window_strides=(1, 1),
            padding=[(pad, pad), (pad, pad)],
            dimension_numbers=("NCHW", "OIHW", "NCHW"))
    if weight is not None:
        a, b = x * weight, pooled * weight
    else:
        a, b = x, pooled
    return jnp.mean((a - b) ** 2)


if __name__ == "__main__":
    key = jax.random.PRNGKey(0)
    k1, k2, k3, k4, k5, k6, k7 = jax.random.split(key, 7)

    # --- single-channel case (typical heatmap use; exercises batch fusion Bblk=2
    #     and the separable-Gaussian fast path) ---
    B, C, H, W = 4, 1, 16, 16
    Ht, Wt = 32, 32
    K = 5

    x = jax.random.normal(k1, (B, C, H, W), dtype=jnp.float32)
    target = jax.random.uniform(k2, (B, C, Ht, Wt), dtype=jnp.float32)
    weight = jax.random.uniform(k3, (B, C, H, W), dtype=jnp.float32)

    # deterministic gaussian smoothing kernel (sigma = 1), normalized by its max
    coords = jnp.arange(K, dtype=jnp.float32) - (K - 1) / 2.0
    g2d = jnp.exp(-(coords[:, None] ** 2 + coords[None, :] ** 2) / 2.0)
    g2d = g2d / g2d.max()
    gauss_kernel = g2d.reshape(1, 1, K, K).astype(jnp.float32)

    # weighted path (separable conv)
    loss_w = weighted_gaussian_mse(x, target, gauss_kernel, weight)
    jax.block_until_ready(loss_w)
    ref_w = _reference_loss(x, target, gauss_kernel, weight)
    assert jnp.allclose(loss_w, ref_w, rtol=1e-4, atol=1e-5), (loss_w, ref_w)

    # unweighted path (no-weight kernel variant, no ones array streamed)
    loss_u = weighted_gaussian_mse(x, target, gauss_kernel, None)
    jax.block_until_ready(loss_u)
    ref_u = _reference_loss(x, target, gauss_kernel, None)
    assert jnp.allclose(loss_u, ref_u, rtol=1e-4, atol=1e-5), (loss_u, ref_u)

    # kernel=None path (conv skipped -> identity, no padding/taps)
    loss_nk = weighted_gaussian_mse(x, target, None, weight)
    jax.block_until_ready(loss_nk)
    ref_nk = _reference_loss(x, target, None, weight)
    assert jnp.allclose(loss_nk, ref_nk, rtol=1e-4, atol=1e-5), (loss_nk, ref_nk)

    # --- multi-channel case (non-separable random kernel -> dense K*K fallback) ---
    B2, C2, K2 = 2, 2, 3
    x2 = jax.random.normal(k4, (B2, C2, H, W), dtype=jnp.float32)
    target2 = jax.random.uniform(k5, (B2, C2, Ht, Wt), dtype=jnp.float32)
    weight2 = jax.random.uniform(k6, (B2, C2, H, W), dtype=jnp.float32)
    kernel2 = jax.random.normal(k7, (C2, C2, K2, K2), dtype=jnp.float32)

    loss_mc = weighted_gaussian_mse(x2, target2, kernel2, weight2)
    jax.block_until_ready(loss_mc)
    ref_mc = _reference_loss(x2, target2, kernel2, weight2)
    assert jnp.allclose(loss_mc, ref_mc, rtol=1e-4, atol=1e-5), (loss_mc, ref_mc)

    print("KERNEL_OK")
</pallas_src>

<mosaic_0001>
module attributes {stable_mosaic.version = 11 : i64} {
  func.func @kernel(%arg0: i32, %arg1: memref<2x1x20x20xf32, #tpu.memory_space<vmem>>, %arg2: memref<2x1x16x16xf32, #tpu.memory_space<vmem>>, %arg3: memref<2x1x16x16xf32, #tpu.memory_space<vmem>>, %arg4: memref<5xf32, #tpu.memory_space<smem>>, %arg5: memref<5xf32, #tpu.memory_space<smem>>, %arg6: memref<1x1x128xf32, #tpu.memory_space<vmem>>) attributes {dimension_semantics = [#tpu.dimension_semantics<parallel>], iteration_bounds = array<i64: 2>, scalar_prefetch = 0 : i64, scratch_operands = 0 : i64, tpu.core_type = #tpu.core_type<tc>, window_params = [{transform_indices = @transform_0, window_bounds = array<i64: 2, 1, 20, 20>}, {transform_indices = @transform_1, window_bounds = array<i64: 2, 1, 16, 16>}, {transform_indices = @transform_2, window_bounds = array<i64: 2, 1, 16, 16>}, {transform_indices = @transform_3, window_bounds = array<i64: 5>}, {transform_indices = @transform_4, window_bounds = array<i64: 5>}, {transform_indices = @transform_5, window_bounds = array<i64: 1, 1, 128>}]} {
    %cst = arith.constant 0.000000e+00 : f32
    %0 = vector.broadcast %cst : f32 to vector<16x16xf32>
    %cst_0 = arith.constant 0.000000e+00 : f32
    %1 = vector.broadcast %cst_0 : f32 to vector<16x16xf32>
    %cst_1 = arith.constant 0.000000e+00 : f32
    %2 = vector.broadcast %cst_1 : f32 to vector<20x16xf32>
    %c0 = arith.constant 0 : index
    %c0_2 = arith.constant 0 : index
    %c0_3 = arith.constant 0 : index
    %c0_4 = arith.constant 0 : index
    %3 = vector.load %arg1[%c0, %c0_2, %c0_3, %c0_4] : memref<2x1x20x20xf32, #tpu.memory_space<vmem>>, vector<1x1x20x16xf32>
    %4 = vector.shape_cast %3 : vector<1x1x20x16xf32> to vector<20x16xf32>
    %c0_5 = arith.constant 0 : index
    %5 = memref.load %arg5[%c0_5] : memref<5xf32, #tpu.memory_space<smem>>
    %6 = vector.broadcast %5 : f32 to vector<20x16xf32>
    %7 = arith.mulf %4, %6 : vector<20x16xf32>
    %8 = arith.addf %2, %7 : vector<20x16xf32>
    %c0_6 = arith.constant 0 : index
    %c0_7 = arith.constant 0 : index
    %c0_8 = arith.constant 0 : index
    %c1 = arith.constant 1 : index
    %9 = vector.load %arg1[%c0_6, %c0_7, %c0_8, %c1] : memref<2x1x20x20xf32, #tpu.memory_space<vmem>>, vector<1x1x20x16xf32>
    %10 = vector.shape_cast %9 : vector<1x1x20x16xf32> to vector<20x16xf32>
    %c1_9 = arith.constant 1 : index
    %11 = memref.load %arg5[%c1_9] : memref<5xf32, #tpu.memory_space<smem>>
    %12 = vector.broadcast %11 : f32 to vector<20x16xf32>
    %13 = arith.mulf %10, %12 : vector<20x16xf32>
    %14 = arith.addf %8, %13 : vector<20x16xf32>
    %c0_10 = arith.constant 0 : index
    %c0_11 = arith.constant 0 : index
    %c0_12 = arith.constant 0 : index
    %c2 = arith.constant 2 : index
    %15 = vector.load %arg1[%c0_10, %c0_11, %c0_12, %c2] : memref<2x1x20x20xf32, #tpu.memory_space<vmem>>, vector<1x1x20x16xf32>
    %16 = vector.shape_cast %15 : vector<1x1x20x16xf32> to vector<20x16xf32>
    %c2_13 = arith.constant 2 : index
    %17 = memref.load %arg5[%c2_13] : memref<5xf32, #tpu.memory_space<smem>>
    %18 = vector.broadcast %17 : f32 to vector<20x16xf32>
    %19 = arith.mulf %16, %18 : vector<20x16xf32>
    %20 = arith.addf %14, %19 : vector<20x16xf32>
    %c0_14 = arith.constant 0 : index
    %c0_15 = arith.constant 0 : index
    %c0_16 = arith.constant 0 : index
    %c3 = arith.constant 3 : index
    %21 = vector.load %arg1[%c0_14, %c0_15, %c0_16, %c3] : memref<2x1x20x20xf32, #tpu.memory_space<vmem>>, vector<1x1x20x16xf32>
    %22 = vector.shape_cast %21 : vector<1x1x20x16xf32> to vector<20x16xf32>
    %c3_17 = arith.constant 3 : index
    %23 = memref.load %arg5[%c3_17] : memref<5xf32, #tpu.memory_space<smem>>
    %24 = vector.broadcast %23 : f32 to vector<20x16xf32>
    %25 = arith.mulf %22, %24 : vector<20x16xf32>
    %26 = arith.addf %20, %25 : vector<20x16xf32>
    %c0_18 = arith.constant 0 : index
    %c0_19 = arith.constant 0 : index
    %c0_20 = arith.constant 0 : index
    %c4 = arith.constant 4 : index
    %27 = vector.load %arg1[%c0_18, %c0_19, %c0_20, %c4] : memref<2x1x20x20xf32, #tpu.memory_space<vmem>>, vector<1x1x20x16xf32>
    %28 = vector.shape_cast %27 : vector<1x1x20x16xf32> to vector<20x16xf32>
    %c4_21 = arith.constant 4 : index
    %29 = memref.load %arg5[%c4_21] : memref<5xf32, #tpu.memory_space<smem>>
    %30 = vector.broadcast %29 : f32 to vector<20x16xf32>
    %31 = arith.mulf %28, %30 : vector<20x16xf32>
    %32 = arith.addf %26, %31 : vector<20x16xf32>
    %33 = vector.extract_strided_slice %32 {offsets = [0, 0], sizes = [16, 16], strides = [1, 1]} : vector<20x16xf32> to vector<16x16xf32>
    %c0_22 = arith.constant 0 : index
    %34 = memref.load %arg4[%c0_22] : memref<5xf32, #tpu.memory_space<smem>>
    %35 = vector.broadcast %34 : f32 to vector<16x16xf32>
    %36 = arith.mulf %33, %35 : vector<16x16xf32>
    %37 = arith.addf %1, %36 : vector<16x16xf32>
    %38 = vector.extract_strided_slice %32 {offsets = [1, 0], sizes = [16, 16], strides = [1, 1]} : vector<20x16xf32> to vector<16x16xf32>
    %c1_23 = arith.constant 1 : index
    %39 = memref.load %arg4[%c1_23] : memref<5xf32, #tpu.memory_space<smem>>
    %40 = vector.broadcast %39 : f32 to vector<16x16xf32>
    %41 = arith.mulf %38, %40 : vector<16x16xf32>
    %42 = arith.addf %37, %41 : vector<16x16xf32>
    %43 = vector.extract_strided_slice %32 {offsets = [2, 0], sizes = [16, 16], strides = [1, 1]} : vector<20x16xf32> to vector<16x16xf32>
    %c2_24 = arith.constant 2 : index
    %44 = memref.load %arg4[%c2_24] : memref<5xf32, #tpu.memory_space<smem>>
    %45 = vector.broadcast %44 : f32 to vector<16x16xf32>
    %46 = arith.mulf %43, %45 : vector<16x16xf32>
    %47 = arith.addf %42, %46 : vector<16x16xf32>
    %48 = vector.extract_strided_slice %32 {offsets = [3, 0], sizes = [16, 16], strides = [1, 1]} : vector<20x16xf32> to vector<16x16xf32>
    %c3_25 = arith.constant 3 : index
    %49 = memref.load %arg4[%c3_25] : memref<5xf32, #tpu.memory_space<smem>>
    %50 = vector.broadcast %49 : f32 to vector<16x16xf32>
    %51 = arith.mulf %48, %50 : vector<16x16xf32>
    %52 = arith.addf %47, %51 : vector<16x16xf32>
    %53 = vector.extract_strided_slice %32 {offsets = [4, 0], sizes = [16, 16], strides = [1, 1]} : vector<20x16xf32> to vector<16x16xf32>
    %c4_26 = arith.constant 4 : index
    %54 = memref.load %arg4[%c4_26] : memref<5xf32, #tpu.memory_space<smem>>
    %55 = vector.broadcast %54 : f32 to vector<16x16xf32>
    %56 = arith.mulf %53, %55 : vector<16x16xf32>
    %57 = arith.addf %52, %56 : vector<16x16xf32>
    %c0_27 = arith.constant 0 : index
    %c0_28 = arith.constant 0 : index
    %c0_29 = arith.constant 0 : index
    %c0_30 = arith.constant 0 : index
    %58 = vector.load %arg2[%c0_27, %c0_28, %c0_29, %c0_30] : memref<2x1x16x16xf32, #tpu.memory_space<vmem>>, vector<1x1x16x16xf32>
    %59 = vector.shape_cast %58 : vector<1x1x16x16xf32> to vector<16x16xf32>
    %60 = arith.subf %59, %57 : vector<16x16xf32>
    %c0_31 = arith.constant 0 : index
    %c0_32 = arith.constant 0 : index
    %c0_33 = arith.constant 0 : index
    %c0_34 = arith.constant 0 : index
    %61 = vector.load %arg3[%c0_31, %c0_32, %c0_33, %c0_34] : memref<2x1x16x16xf32, #tpu.memory_space<vmem>>, vector<1x1x16x16xf32>
    %62 = vector.shape_cast %61 : vector<1x1x16x16xf32> to vector<16x16xf32>
    %63 = arith.mulf %60, %62 : vector<16x16xf32>
    %64 = arith.mulf %63, %63 : vector<16x16xf32>
    %65 = arith.addf %0, %64 : vector<16x16xf32>
    %cst_35 = arith.constant 0.000000e+00 : f32
    %66 = vector.broadcast %cst_35 : f32 to vector<16x16xf32>
    %cst_36 = arith.constant 0.000000e+00 : f32
    %67 = vector.broadcast %cst_36 : f32 to vector<20x16xf32>
    %c1_37 = arith.constant 1 : index
    %c0_38 = arith.constant 0 : index
    %c0_39 = arith.constant 0 : index
    %c0_40 = arith.constant 0 : index
    %68 = vector.load %arg1[%c1_37, %c0_38, %c0_39, %c0_40] : memref<2x1x20x20xf32, #tpu.memory_space<vmem>>, vector<1x1x20x16xf32>
    %69 = vector.shape_cast %68 : vector<1x1x20x16xf32> to vector<20x16xf32>
    %c0_41 = arith.constant 0 : index
    %70 = memref.load %arg5[%c0_41] : memref<5xf32, #tpu.memory_space<smem>>
    %71 = vector.broadcast %70 : f32 to vector<20x16xf32>
    %72 = arith.mulf %69, %71 : vector<20x16xf32>
    %73 = arith.addf %67, %72 : vector<20x16xf32>
    %c1_42 = arith.constant 1 : index
    %c0_43 = arith.constant 0 : index
    %c0_44 = arith.constant 0 : index
    %c1_45 = arith.constant 1 : index
    %74 = vector.load %arg1[%c1_42, %c0_43, %c0_44, %c1_45] : memref<2x1x20x20xf32, #tpu.memory_space<vmem>>, vector<1x1x20x16xf32>
    %75 = vector.shape_cast %74 : vector<1x1x20x16xf32> to vector<20x16xf32>
    %c1_46 = arith.constant 1 : index
    %76 = memref.load %arg5[%c1_46] : memref<5xf32, #tpu.memory_space<smem>>
    %77 = vector.broadcast %76 : f32 to vector<20x16xf32>
    %78 = arith.mulf %75, %77 : vector<20x16xf32>
    %79 = arith.addf %73, %78 : vector<20x16xf32>
    %c1_47 = arith.constant 1 : index
    %c0_48 = arith.constant 0 : index
    %c0_49 = arith.constant 0 : index
    %c2_50 = arith.constant 2 : index
    %80 = vector.load %arg1[%c1_47, %c0_48, %c0_49, %c2_50] : memref<2x1x20x20xf32, #tpu.memory_space<vmem>>, vector<1x1x20x16xf32>
    %81 = vector.shape_cast %80 : vector<1x1x20x16xf32> to vector<20x16xf32>
    %c2_51 = arith.constant 2 : index
    %82 = memref.load %arg5[%c2_51] : memref<5xf32, #tpu.memory_space<smem>>
    %83 = vector.broadcast %82 : f32 to vector<20x16xf32>
    %84 = arith.mulf %81, %83 : vector<20x16xf32>
    %85 = arith.addf %79, %84 : vector<20x16xf32>
    %c1_52 = arith.constant 1 : index
    %c0_53 = arith.constant 0 : index
    %c0_54 = arith.constant 0 : index
    %c3_55 = arith.constant 3 : index
    %86 = vector.load %arg1[%c1_52, %c0_53, %c0_54, %c3_55] : memref<2x1x20x20xf32, #tpu.memory_space<vmem>>, vector<1x1x20x16xf32>
    %87 = vector.shape_cast %86 : vector<1x1x20x16xf32> to vector<20x16xf32>
    %c3_56 = arith.constant 3 : index
    %88 = memref.load %arg5[%c3_56] : memref<5xf32, #tpu.memory_space<smem>>
    %89 = vector.broadcast %88 : f32 to vector<20x16xf32>
    %90 = arith.mulf %87, %89 : vector<20x16xf32>
    %91 = arith.addf %85, %90 : vector<20x16xf32>
    %c1_57 = arith.constant 1 : index
    %c0_58 = arith.constant 0 : index
    %c0_59 = arith.constant 0 : index
    %c4_60 = arith.constant 4 : index
    %92 = vector.load %arg1[%c1_57, %c0_58, %c0_59, %c4_60] : memref<2x1x20x20xf32, #tpu.memory_space<vmem>>, vector<1x1x20x16xf32>
    %93 = vector.shape_cast %92 : vector<1x1x20x16xf32> to vector<20x16xf32>
    %c4_61 = arith.constant 4 : index
    %94 = memref.load %arg5[%c4_61] : memref<5xf32, #tpu.memory_space<smem>>
    %95 = vector.broadcast %94 : f32 to vector<20x16xf32>
    %96 = arith.mulf %93, %95 : vector<20x16xf32>
    %97 = arith.addf %91, %96 : vector<20x16xf32>
    %98 = vector.extract_strided_slice %97 {offsets = [0, 0], sizes = [16, 16], strides = [1, 1]} : vector<20x16xf32> to vector<16x16xf32>
    %c0_62 = arith.constant 0 : index
    %99 = memref.load %arg4[%c0_62] : memref<5xf32, #tpu.memory_space<smem>>
    %100 = vector.broadcast %99 : f32 to vector<16x16xf32>
    %101 = arith.mulf %98, %100 : vector<16x16xf32>
    %102 = arith.addf %66, %101 : vector<16x16xf32>
    %103 = vector.extract_strided_slice %97 {offsets = [1, 0], sizes = [16, 16], strides = [1, 1]} : vector<20x16xf32> to vector<16x16xf32>
    %c1_63 = arith.constant 1 : index
    %104 = memref.load %arg4[%c1_63] : memref<5xf32, #tpu.memory_space<smem>>
    %105 = vector.broadcast %104 : f32 to vector<16x16xf32>
    %106 = arith.mulf %103, %105 : vector<16x16xf32>
    %107 = arith.addf %102, %106 : vector<16x16xf32>
    %108 = vector.extract_strided_slice %97 {offsets = [2, 0], sizes = [16, 16], strides = [1, 1]} : vector<20x16xf32> to vector<16x16xf32>
    %c2_64 = arith.constant 2 : index
    %109 = memref.load %arg4[%c2_64] : memref<5xf32, #tpu.memory_space<smem>>
    %110 = vector.broadcast %109 : f32 to vector<16x16xf32>
    %111 = arith.mulf %108, %110 : vector<16x16xf32>
    %112 = arith.addf %107, %111 : vector<16x16xf32>
    %113 = vector.extract_strided_slice %97 {offsets = [3, 0], sizes = [16, 16], strides = [1, 1]} : vector<20x16xf32> to vector<16x16xf32>
    %c3_65 = arith.constant 3 : index
    %114 = memref.load %arg4[%c3_65] : memref<5xf32, #tpu.memory_space<smem>>
    %115 = vector.broadcast %114 : f32 to vector<16x16xf32>
    %116 = arith.mulf %113, %115 : vector<16x16xf32>
    %117 = arith.addf %112, %116 : vector<16x16xf32>
    %118 = vector.extract_strided_slice %97 {offsets = [4, 0], sizes = [16, 16], strides = [1, 1]} : vector<20x16xf32> to vector<16x16xf32>
    %c4_66 = arith.constant 4 : index
    %119 = memref.load %arg4[%c4_66] : memref<5xf32, #tpu.memory_space<smem>>
    %120 = vector.broadcast %119 : f32 to vector<16x16xf32>
    %121 = arith.mulf %118, %120 : vector<16x16xf32>
    %122 = arith.addf %117, %121 : vector<16x16xf32>
    %c1_67 = arith.constant 1 : index
    %c0_68 = arith.constant 0 : index
    %c0_69 = arith.constant 0 : index
    %c0_70 = arith.constant 0 : index
    %123 = vector.load %arg2[%c1_67, %c0_68, %c0_69, %c0_70] : memref<2x1x16x16xf32, #tpu.memory_space<vmem>>, vector<1x1x16x16xf32>
    %124 = vector.shape_cast %123 : vector<1x1x16x16xf32> to vector<16x16xf32>
    %125 = arith.subf %124, %122 : vector<16x16xf32>
    %c1_71 = arith.constant 1 : index
    %c0_72 = arith.constant 0 : index
    %c0_73 = arith.constant 0 : index
    %c0_74 = arith.constant 0 : index
    %126 = vector.load %arg3[%c1_71, %c0_72, %c0_73, %c0_74] : memref<2x1x16x16xf32, #tpu.memory_space<vmem>>, vector<1x1x16x16xf32>
    %127 = vector.shape_cast %126 : vector<1x1x16x16xf32> to vector<16x16xf32>
    %128 = arith.mulf %125, %127 : vector<16x16xf32>
    %129 = arith.mulf %128, %128 : vector<16x16xf32>
    %130 = arith.addf %65, %129 : vector<16x16xf32>
    %131 = vector.shape_cast %130 : vector<16x16xf32> to vector<1x16x16xf32>
    %cst_75 = arith.constant dense<0.000000e+00> : vector<1xf32>
    %132 = vector.multi_reduction <add>, %131, %cst_75 [1, 2] : vector<1x16x16xf32> to vector<1xf32>
    %133 = vector.shape_cast %132 : vector<1xf32> to vector<1x1x1xf32>
    %134 = vector.extract %133[0, 0, 0] : f32 from vector<1x1x1xf32>
    %135 = vector.broadcast %134 : f32 to vector<1x1x128xf32>
    %c0_76 = arith.constant 0 : index
    %c0_77 = arith.constant 0 : index
    %c0_78 = arith.constant 0 : index
    %136 = vector.load %arg6[%c0_76, %c0_77, %c0_78] : memref<1x1x128xf32, #tpu.memory_space<vmem>>, vector<1x1x128xf32>
    tpu.vector_store %arg6[%c0_76, %c0_77, %c0_78], %135 {strides = array<i32>} : memref<1x1x128xf32, #tpu.memory_space<vmem>>, vector<1x1x128xf32>,
    return
  }
  func.func @transform_0(%arg0: i32) -> (i32, i32, i32, i32) {
    %c0_i32 = arith.constant 0 : i32
    %c0_i32_0 = arith.constant 0 : i32
    %c0_i32_1 = arith.constant 0 : i32
    %c0_i32_2 = arith.constant 0 : i32
    return %arg0, %c0_i32, %c0_i32_0, %c0_i32_1 : i32, i32, i32, i32
  }
  func.func @transform_1(%arg0: i32) -> (i32, i32, i32, i32) {
    %c0_i32 = arith.constant 0 : i32
    %c0_i32_0 = arith.constant 0 : i32
    %c0_i32_1 = arith.constant 0 : i32
    %c0_i32_2 = arith.constant 0 : i32
    return %arg0, %c0_i32, %c0_i32_0, %c0_i32_1 : i32, i32, i32, i32
  }
  func.func @transform_2(%arg0: i32) -> (i32, i32, i32, i32) {
    %c0_i32 = arith.constant 0 : i32
    %c0_i32_0 = arith.constant 0 : i32
    %c0_i32_1 = arith.constant 0 : i32
    %c0_i32_2 = arith.constant 0 : i32
    return %arg0, %c0_i32, %c0_i32_0, %c0_i32_1 : i32, i32, i32, i32
  }
  func.func @transform_3(%arg0: i32) -> i32 {
    %c0_i32 = arith.constant 0 : i32
    %c0_i32_0 = arith.constant 0 : i32
    return %c0_i32 : i32
  }
  func.func @transform_4(%arg0: i32) -> i32 {
    %c0_i32 = arith.constant 0 : i32
    %c0_i32_0 = arith.constant 0 : i32
    return %c0_i32 : i32
  }
  func.func @transform_5(%arg0: i32) -> (i32, i32, i32) {
    %c0_i32 = arith.constant 0 : i32
    %c0_i32_0 = arith.constant 0 : i32
    %c0_i32_1 = arith.constant 0 : i32
    return %arg0, %c0_i32, %c0_i32_0 : i32, i32, i32
  }
}

</mosaic_0001>

<bundles_post_ra>
// kernel: tpu_custom_call.1
= control target key start
LH: loop header
LB: loop body
LE: loop exit
PB: predicated region body
PF: predicated region fallthrough
CT: control target
= control target key end

     0   :  { %10 = vsyncpa [#allocation4], 0  ;;  %s1249_s0 = inlined_call_operand.vmem [shape: f32[4,1,20,20], index: 0, kind: input, shape index: {}]   ;;  %s1250_s1 = inlined_call_operand.vmem [shape: f32[4,1,16,16], index: 1, kind: input, shape index: {}]   ;;  %s1251_s2 = inlined_call_operand.vmem [shape: f32[4,1,16,16], index: 2, kind: input, shape index: {}]   ;;  %s1252_s3 = inlined_call_operand.vmem [shape: f32[5], index: 3, kind: input, shape index: {}]   ;;  %s1253_s4 = inlined_call_operand.vmem [shape: f32[5], index: 4, kind: input, shape index: {}]   ;;  %s1254_s5 = inlined_call_operand.hbm [shape: f32[2,1,128], index: 5, kind: output, shape index: {}]  }
   0x1   :  { %11 = vsyncpa [#allocation6], 0 }
   0x2   :  { %12 = vsyncpa [#allocation3], 0 }
   0x3   :  { %14 = vsyncpa [#allocation3 + $0x1], 0  ;;  %s1014_s18 = smov 0   ;;  %s1016_s19 = smov 0  }
   0x4   :  { %s1018_s20 = smov 0   ;;  %s1020_s21 = smov 0  }
   0x5 LB: > { %s1035_s22 = sadd.s32 4294967295, %s976_s21   ;;  %s774_s23 = sadd.s32 4294967294, %s976_s21   ;;  %s976_s21 = sphi %s1020_s21, %s1260_s21   ;;  %s972_s20 = sphi %s1018_s20, %s1259_s20   ;;  %s968_s19 = sphi %s1016_s19, %s1258_s19   ;;  %s964_s18 = sphi %s1014_s18, %s1257_s18  }
   0x6   : > { %s1039_s24 = sadd.s32 1, %s976_s21   ;;  %s147_s25 = sadd.s32 1, %s972_s20 }
   0x7   : > { %s144_s26 = ssub.s32 %s976_s21, %s1039_s24  ;;  %p157_p0 = scmp.ne.s32.totalorder %s972_s20, %s968_s19 }
   0x8   : > { %p145_p1 = scmp.eq.s32.totalorder %s144_s26, 0  ;;  %p158_p2 = scmp.eq.s32.totalorder %s1035_s22, 1 }
   0x9   : > { %p163_p3 = scmp.ne.s32.totalorder %s968_s19, %s964_s18  ;;  %p164_p4 = scmp.eq.s32.totalorder %s774_s23, 1 }
   0xa   : > { %s1050_s27 = scalar_select %p145_p1, %s972_s20, %s147_s25  }
   0xb   : > { %p1052_p5 = por %p158_p2, %p157_p0  ;;  %p1056_p6 = por %p164_p4, %p163_p3 }
   0xc   : > { %p775_p7 = scmp.ge.s32.totalorder %s976_s21, 1  ;;  %p171_p8 = scmp.lt.s32.totalorder %s976_s21, 3 }
   0xd   : > { %p833_p9 = scmp.eq.s32.totalorder %s1035_s22, 0  ;;  %s183_s7 = sshll.u32 %s1252_s3, 4  ;;  %s184_s7 = int_to_ptr.vmem [resolvable:$true] %s183_s7 }
   0xe   : > { %p172_p10 = pnand %p775_p7, %p171_p8  ;;  %s193_s10 = sshll.u32 %s1253_s4, 4  ;;  %s194_s10 = int_to_ptr.vmem [resolvable:$true] %s193_s10 }
   0xf   : > { %s978_s11 = smov [#allocation2]   ;;  %s979_s12 = smov [#allocation5]  }
  0x10   : > { %p822_p11 = pneg %p172_p10 }
  0x11   : > { %236 = sbr.rel (%p172_p10) target bundleno = 417 (0x1a1), region = 40 }
  0x12   : > { %p823_p12 = pnand %p833_p9, %p822_p11 }
  0x14   : > { %825 = dma.vmem_to_smem (!%p823_p12), %s184_s7, 16, %s978_s11, [#allocation4]  }
  0x15   : > { %828 = dma.vmem_to_smem (!%p823_p12), %s194_s10, 16, %s979_s12, [#allocation6]  }
  0x16   : > { %951 = dma.done.wait (%p833_p9), [#allocation4], 16  }
  0x17   : > { %953 = vsyncadd (%p833_p9), [#allocation4], 4294967280 }
  0x18   : > { %955 = dma.done.wait (%p833_p9), [#allocation6], 16  }
  0x19   : > { %957 = vsyncadd (%p833_p9), [#allocation6], 4294967280 }
  0x1a   : > { %248 = sfence }
  0x1b   : > { %s782_s13 = sshll.u32 %s1035_s22, 1  ;;  %s790_s14 = sld [smem:[#allocation5 + $0x1]]  ;;  %vm409_vm0 = vcmask 1046528   ;;  %vm427_vm1 = vcmask 1045504   ;;  %vm445_vm2 = vcmask 1044480   ;;  %vm463_vm3 = vcmask 1043456  }
  0x1c   : > { %p284_p13 = scmp.lt.s32.totalorder %s782_s13, 3  ;;  %s980_s25 = smov 127   ;;  %vm645_vm4 = vcmask 130048  }
  0x1d   : > { %s791_s26 = sld [smem:[#allocation5 + $0x2]]  ;;  %s981_s30 = smov 126  }
  0x1e   : > { %s1262_s13 = smov (!%p284_p13, %s782_s13), 3  ;;  %s792_s6 = sld [smem:[#allocation5 + $0x3]] }
  0x1f   : > { %s809_s15 = smul.u32 24, %s1262_s13  ;;  %s982_s7 = smov 125  }
  0x20   : > { %s793_s8 = sld [smem:[#allocation5 + $0x4]]  ;;  %s983_s9 = smov 124  }
  0x21   : > { %v316_v0 = vstv %s790_s14  ;;  %s288_s23 = scalar_lea.vmem %s1249_s0, %s809_s15  ;;  %s307_s10 = sld [smem:[#allocation5]] }
  0x22   : > { %v1086_v1 = vld [vmem:[%s288_s23 + $0x20] sm:$0xff]  ;;  %v1088_v2 = vld [vmem:[%s288_s23 + $0x10] sm:$0xf]  ;;  %v1095_v7 = vld [vmem:[%s288_s23 + $0x28] sm:$0xf]  ;;  %s794_s11 = sld [smem:[#allocation2 + $0x1]] }
  0x23   : > { %v1090_v3 = vld [vmem:[%s288_s23] sm:$0xff]  ;;  %v496_v4 = vmul.f32 %v1086_v1, %v316_v0  ;;  %v319_v5 = vmul.f32 %v316_v0, %v1088_v2  ;;  %v1097_v8 = vld [vmem:[%s288_s23 + $0x18] sm:$0xff]  ;;  %v1099_v9 = vld [vmem:[%s288_s23 + $0x8] sm:$0xff]  ;;  %v497_v10 = vmul.f32 %v1095_v7, %v316_v0  ;;  %v336_v13 = vstv %s791_s26  ;;  %s795_s12 = sld [smem:[#allocation2 + $0x2]]  ;;  %s807_s17 = sshll.u32 %s1262_s13, 4 }
  0x24   : > { %v317_v6 = vmul.f32 %v316_v0, %v1090_v3  ;;  %v495_v11 = vmul.f32 %v1097_v8, %v316_v0  ;;  %v318_v12 = vmul.f32 %v316_v0, %v1099_v9  ;;  %v339_v14 = vmul.f32 %v336_v13, %v1088_v2  ;;  %s796_s14 = sld [smem:[#allocation2 + $0x3]]  ;;  %s1191_s26 = scalar_lea.vmem %s1250_s1, %s807_s17 }
  0x25   : > { %503 = vrot.lane.b32.xlu2 %v496_v4, %s980_s25  ;;  %327 = vrot.lane.b32.xlu1 %v319_v5, %s980_s25  ;;  %v338_v15 = vmul.f32 %v336_v13, %v1099_v9  ;;  %v337_v16 = vmul.f32 %v336_v13, %v1090_v3  ;;  %v515_v17 = vmul.f32 %v1095_v7, %v336_v13  ;;  %v356_v20 = vstv %s792_s6  ;;  %s797_s15 = sld [smem:[#allocation2 + $0x4]]  ;;  %s281_s13 = sand.u32 1, %s968_s19  }
  0x26   : > { %323 = vrot.lane.b32.xlu0 %v317_v6, %s980_s25  ;;  %v514_v18 = vmul.f32 %v1086_v1, %v336_v13  ;;  %v513_v19 = vmul.f32 %v1097_v8, %v336_v13  ;;  %v359_v21 = vmul.f32 %v356_v20, %v1088_v2  ;;  %v358_v22 = vmul.f32 %v356_v20, %v1099_v9  ;;  %s395_s16 = sld [smem:[#allocation2]] }
  0x27   : > { %v357_v23 = vmul.f32 %v356_v20, %v1090_v3  ;;  %v533_v24 = vmul.f32 %v1095_v7, %v356_v20  ;;  %v532_v25 = vmul.f32 %v1086_v1, %v356_v20  ;;  %v531_v26 = vmul.f32 %v1097_v8, %v356_v20 }
  0x28   : > { %v376_v27 = vstv %s793_s8  ;;  %v308_v47 = vstv %s307_s10  ;;  %v1128_v5 = vstv %s794_s11  ;;  %s669_s10 = scalar_lea.hbm %s1254_s5, %s1035_s22  ;;  %s282_s11 = scalar_lea.vmem [#allocation7], %s281_s13 }
  0x29   : > { %v379_v28 = vmul.f32 %v376_v27, %v1088_v2  ;;  %v378_v29 = vmul.f32 %v376_v27, %v1099_v9  ;;  %v377_v30 = vmul.f32 %v376_v27, %v1090_v3  ;;  %v551_v31 = vmul.f32 %v1095_v7, %v376_v27  ;;  %s926_s22 = scalar_lea.hbm %s1254_s5, 2 }
  0x2a   : > { %v550_v32 = vmul.f32 %v1086_v1, %v376_v27  ;;  %v549_v33 = vmul.f32 %v1097_v8, %v376_v27  ;;  %v311_v49 = vmul.f32 %v308_v47, %v1088_v2  ;;  %v491_v51 = vmul.f32 %v1095_v7, %v308_v47 }
  0x2b   : > { %v310_v59 = vmul.f32 %v308_v47, %v1099_v9  ;;  %v490_v60 = vmul.f32 %v1086_v1, %v308_v47  ;;  %v309_v61 = vmul.f32 %v308_v47, %v1090_v3  ;;  %v489_v62 = vmul.f32 %v1097_v8, %v308_v47 }
  0x2c   : > { %v1130_v6 = vstv %s795_s12  ;;  %s671_s12 = sshll.u32 %s282_s11, 4  ;;  %s672_s12 = int_to_ptr.vmem [resolvable:$true] %s671_s12 }
  0x2d   : > { %505 = vrot.lane.b32.xlu2 %v497_v10, %s980_s25  ;;  %501 = vrot.lane.b32.xlu1 %v495_v11, %s980_s25  ;;  %v1132_v11 = vstv %s796_s14  ;;  %s673_s14 = sshll.u32 %s669_s10, 4  ;;  %s674_s14 = int_to_ptr.hbm [resolvable:$true] %s673_s14 }
  0x2e   : > { %325 = vrot.lane.b32.xlu0 %v318_v12, %s980_s25  ;;  %v1134_v12 = vstv %s797_s15 }
  0x35   : > { %347 = vrot.lane.b32.xlu2 %v339_v14, %s981_s30  ;;  %345 = vrot.lane.b32.xlu1 %v338_v15, %s981_s30  ;;  %v1137_v15 = vstv %s395_s16  ;;  %s661_s16 = scalar_lea.sflag [#allocation3], %s281_s13 }
  0x36   : > { %343 = vrot.lane.b32.xlu0 %v337_v16, %s981_s30 }
  0x3d   : > { %523 = vrot.lane.b32.xlu2 %v515_v17, %s981_s30  ;;  %521 = vrot.lane.b32.xlu1 %v514_v18, %s981_s30 }
  0x3e   : > { %519 = vrot.lane.b32.xlu0 %v513_v19, %s981_s30 }
  0x45   : > { %367 = vrot.lane.b32.xlu2 %v359_v21, %s982_s7  ;;  %365 = vrot.lane.b32.xlu1 %v358_v22, %s982_s7 }
  0x46   : > { %363 = vrot.lane.b32.xlu0 %v357_v23, %s982_s7 }
  0x4d   : > { %541 = vrot.lane.b32.xlu2 %v533_v24, %s982_s7  ;;  %539 = vrot.lane.b32.xlu1 %v532_v25, %s982_s7 }
  0x4e   : > { %537 = vrot.lane.b32.xlu0 %v531_v26, %s982_s7  ;;  %s302_s7 = scalar_lea.vmem %s1251_s2, %s807_s17  ;;  %s920_s17 = sshra.s32 %s674_s14, 4  ;;  %s921_s17 = int_to_ptr.hbm [resolvable:$true] %s920_s17 }
  0x4f   : > { %s922_s23 = scalar_lea.hbm %s921_s17, 1  ;;  %p927_p3 = scmp.lt.s32.totalorder %s921_s17, %s1254_s5 }
  0x50   : > { %p923_p0 = scmp.ne.s32.totalorder %s921_s17, %s922_s23  ;;  %p928_p4 = scmp.lt.s32.totalorder %s926_s22, %s922_s23 }
  0x52   : > { %p924_p1 = pnand %p923_p0, %p1052_p5  ;;  %p929_p7 = por %p928_p4, %p927_p3 }
  0x54   : > { %p925_p2 = pneg %p924_p1 }
  0x55   : > { %387 = vrot.lane.b32.xlu2 %v379_v28, %s983_s9  ;;  %385 = vrot.lane.b32.xlu1 %v378_v29, %s983_s9 }
  0x56   : > { %383 = vrot.lane.b32.xlu0 %v377_v30, %s983_s9  ;;  %p930_p8 = pnand %p929_p7, %p925_p2 }
  0x5d   : > { %559 = vrot.lane.b32.xlu2 %v551_v31, %s983_s9  ;;  %557 = vrot.lane.b32.xlu1 %v550_v32, %s983_s9 }
  0x5e   : > { %555 = vrot.lane.b32.xlu0 %v549_v33, %s983_s9 }
  0x7f   : > { %v504_v34 = vpop.permute.xlu2 %503 }
  0x80   : > { %v511_v1 = vadd.f32 %v504_v34, %v490_v60 }
  0x87   : > { %v506_v35 = vpop.permute.xlu2 %505 }
  0x88   : > { %v512_v55 = vadd.f32 %v506_v35, %v491_v51 }
  0x8f   : > { %v348_v36 = vpop.permute.xlu2 %347 }
  0x97   : > { %v524_v37 = vpop.permute.xlu2 %523  ;;  %v328_v38 = vpop.permute.xlu1 %327 }
  0x98   : > { %v324_v39 = vpop.permute.xlu0 %323  ;;  %v334_v52 = vadd.f32 %v328_v38, %v311_v49  ;;  %v530_v57 = vadd.f32 %v524_v37, %v512_v55 }
  0x99   : > { %v332_v13 = vadd.f32 %v324_v39, %v309_v61 }
  0x9a   : > { %v354_v56 = vadd.f32 %v348_v36, %v334_v52 }
  0x9f   : > { %v502_v40 = vpop.permute.xlu1 %501  ;;  %v368_v41 = vpop.permute.xlu2 %367 }
  0xa0   : > { %v326_v42 = vpop.permute.xlu0 %325  ;;  %v374_v58 = vadd.f32 %v368_v41, %v354_v56  ;;  %v510_v3 = vadd.f32 %v502_v40, %v489_v62 }
  0xa1   : > { %v333_v10 = vadd.f32 %v326_v42, %v310_v59 }
  0xa7   : > { %v346_v43 = vpop.permute.xlu1 %345  ;;  %v542_v45 = vpop.permute.xlu2 %541 }
  0xa8   : > { %v344_v44 = vpop.permute.xlu0 %343  ;;  %v548_v0 = vadd.f32 %v542_v45, %v530_v57  ;;  %v353_v14 = vadd.f32 %v346_v43, %v333_v10 }
  0xa9   : > { %v352_v16 = vadd.f32 %v344_v44, %v332_v13 }
  0xaf   : > { %v522_v46 = vpop.permute.xlu1 %521  ;;  %v388_v50 = vpop.permute.xlu2 %387 }
  0xb0   : > { %v520_v48 = vpop.permute.xlu0 %519  ;;  %v394_v2 = vadd.f32 %v388_v50, %v374_v58  ;;  %v529_v20 = vadd.f32 %v522_v46, %v511_v1 }
  0xb1   : > { %v528_v24 = vadd.f32 %v520_v48, %v510_v3 }
  0xb2   : > { %v405_v8 = vmul.f32 %v1128_v5, %v394_v2  ;;  %v423_v17 = vmul.f32 %v1130_v6, %v394_v2  ;;  %v441_v18 = vmul.f32 %v1132_v11, %v394_v2  ;;  %v459_v19 = vmul.f32 %v1134_v12, %v394_v2 }
  0xb4   : > { %v413_v27 = vrot.slane %v405_v8, 1  ;;  %v431_v30 = vrot.slane %v423_v17, 2  ;;  %v449_v31 = vrot.slane %v441_v18, 3  ;;  %v467_v32 = vrot.slane %v459_v19, 4 }
  0xb7   : > { %v366_v53 = vpop.permute.xlu1 %365  ;;  %v560_v63 = vpop.permute.xlu2 %559 }
  0xb8   : > { %v364_v54 = vpop.permute.xlu0 %363  ;;  %v566_v9 = vadd.f32 %v560_v63, %v548_v0  ;;  %v373_v26 = vadd.f32 %v366_v53, %v353_v14 }
  0xb9   : > { %v372_v28 = vadd.f32 %v364_v54, %v352_v16 }
  0xba   : > { %v1143_v21 = vmul.f32 %v566_v9, %v1128_v5  ;;  %v1146_v22 = vmul.f32 %v566_v9, %v1130_v6  ;;  %v1149_v23 = vmul.f32 %v566_v9, %v1132_v11  ;;  %v1152_v25 = vmul.f32 %v566_v9, %v1134_v12 }
  0xbc   : > { %v580_v35 = vrot.slane %v1143_v21, 1  ;;  %v595_v36 = vrot.slane %v1146_v22, 2  ;;  %v610_v37 = vrot.slane %v1149_v23, 3  ;;  %v625_v39 = vrot.slane %v1152_v25, 4  ;;  %v803_v25 = vld [vmem:[%s302_s7 + $0x10] sm:$0xff] }
  0xbf   : > { %v540_v4 = vpop.permute.xlu1 %539 }
  0xc0   : > { %v538_v7 = vpop.permute.xlu0 %537  ;;  %v547_v55 = vadd.f32 %v540_v4, %v529_v20 }
  0xc1   : > { %v546_v56 = vadd.f32 %v538_v7, %v528_v24 }
  0xc7   : > { %v386_v29 = vpop.permute.xlu1 %385 }
  0xc8   : > { %v393_v33 = vadd.f32 %v386_v29, %v373_v26  ;;  %v384_v34 = vpop.permute.xlu0 %383 }
  0xc9   : > { %v392_v38 = vadd.f32 %v384_v34, %v372_v28 }
  0xca   : > { %v404_v40 = vmul.f32 %v1128_v5, %v393_v33  ;;  %v422_v41 = vmul.f32 %v1130_v6, %v393_v33  ;;  %v440_v42 = vmul.f32 %v1132_v11, %v393_v33  ;;  %v398_v43 = vmul.f32 %v1137_v15, %v393_v33 }
  0xcb   : > { %v458_v44 = vmul.f32 %v1134_v12, %v393_v33  ;;  %v403_v45 = vmul.f32 %v1128_v5, %v392_v38  ;;  %v421_v46 = vmul.f32 %v1130_v6, %v392_v38  ;;  %v439_v50 = vmul.f32 %v1132_v11, %v392_v38 }
  0xcc   : > { %v411_v47 = vrot.slane %v404_v40, 1  ;;  %v429_v48 = vrot.slane %v422_v41, 2  ;;  %v447_v49 = vrot.slane %v440_v42, 3  ;;  %v457_v54 = vmul.f32 %v1134_v12, %v392_v38 }
  0xcd   : > { %v465_v51 = vrot.slane %v458_v44, 4  ;;  %v410_v52 = vrot.slane %v403_v45, 1  ;;  %v428_v53 = vrot.slane %v421_v46, 2  ;;  %v446_v58 = vrot.slane %v439_v50, 3 }
  0xce   : > { %v414_v57 = vsel %vm409_vm0, %v411_v47, %v413_v27  ;;  %v397_v60 = vmul.f32 %v1137_v15, %v392_v38  ;;  %v432_v63 = vsel %vm427_vm1, %v429_v48, %v431_v30  ;;  %v464_v0 = vrot.slane %v457_v54, 4  ;;  %v478_v54 = vld [vmem:[%s302_s7 + $0x8] sm:$0xff] }
  0xcf   : > { %v418_v59 = vadd.f32 %v414_v57, %v398_v43  ;;  %v412_v61 = vsel %vm409_vm0, %v410_v52, %v411_v47  ;;  %v558_v62 = vpop.permute.xlu1 %557  ;;  %v430_v9 = vsel %vm427_vm1, %v428_v53, %v429_v48  ;;  %v450_v4 = vsel %vm445_vm2, %v447_v49, %v449_v31  ;;  %v474_v43 = vld [vmem:[%s1191_s26 + $0x8] sm:$0xff]  ;;  %v477_v57 = vld [vmem:[%s302_s7] sm:$0xff] }
  0xd0   : > { %v565_v2 = vadd.f32 %v558_v62, %v547_v55  ;;  %v556_v10 = vpop.permute.xlu0 %555  ;;  %v417_v7 = vadd.f32 %v412_v61, %v397_v60  ;;  %v448_v13 = vsel %vm445_vm2, %v446_v58, %v447_v49  ;;  %v468_v3 = vsel %vm463_vm3, %v465_v51, %v467_v32  ;;  %v804_v60 = vld [vmem:[%s302_s7 + $0x18] sm:$0xff] }
  0xd1   : > { %v564_v1 = vadd.f32 %v556_v10, %v546_v56  ;;  %v436_v17 = vadd.f32 %v432_v63, %v418_v59  ;;  %v802_v56 = vld [vmem:[%s1191_s26 + $0x18] sm:$0xff]  ;;  %v801_v59 = vld [vmem:[%s1191_s26 + $0x10] sm:$0xff] }
  0xd2   : > { %v572_v14 = vmul.f32 %v565_v2, %v1128_v5  ;;  %v587_v8 = vmul.f32 %v565_v2, %v1130_v6  ;;  %v602_v16 = vmul.f32 %v565_v2, %v1132_v11  ;;  %v568_v18 = vmul.f32 %v565_v2, %v1137_v15 }
  0xd3   : > { %v617_v19 = vmul.f32 %v565_v2, %v1134_v12  ;;  %v571_v20 = vmul.f32 %v564_v1, %v1128_v5  ;;  %v586_v21 = vmul.f32 %v564_v1, %v1130_v6  ;;  %v567_v27 = vmul.f32 %v564_v1, %v1137_v15 }
  0xd4   : > { %v578_v24 = vrot.slane %v572_v14, 1  ;;  %v593_v26 = vrot.slane %v587_v8, 2  ;;  %v601_v28 = vmul.f32 %v564_v1, %v1132_v11  ;;  %v608_v29 = vrot.slane %v602_v16, 3 }
  0xd5   : > { %v577_v30 = vrot.slane %v571_v20, 1  ;;  %v592_v31 = vrot.slane %v586_v21, 2  ;;  %v616_v32 = vmul.f32 %v564_v1, %v1134_v12  ;;  %v623_v6 = vrot.slane %v617_v19, 4 }
  0xd6   : > { %v581_v5 = vsel %vm409_vm0, %v578_v24, %v580_v35  ;;  %v435_v15 = vadd.f32 %v430_v9, %v417_v7  ;;  %v454_v33 = vadd.f32 %v450_v4, %v436_v17  ;;  %v607_v38 = vrot.slane %v601_v28, 3  ;;  %v473_v35 = vld [vmem:[%s1191_s26] sm:$0xff] }
  0xd7   : > { %v585_v11 = vadd.f32 %v581_v5, %v568_v18  ;;  %v579_v34 = vsel %vm409_vm0, %v577_v30, %v578_v24  ;;  %v466_v12 = vsel %vm463_vm3, %v464_v0, %v465_v51  ;;  %v596_v44 = vsel %vm427_vm1, %v593_v26, %v595_v36 }
  0xd8   : > { %v584_v40 = vadd.f32 %v579_v34, %v567_v27  ;;  %v453_v41 = vadd.f32 %v448_v13, %v435_v15  ;;  %v472_v42 = vadd.f32 %v468_v3, %v454_v33  ;;  %v622_v45 = vrot.slane %v616_v32, 4 }
  0xd9   : > { %v594_v46 = vsel %vm427_vm1, %v592_v31, %v593_v26  ;;  %v600_v47 = vadd.f32 %v596_v44, %v585_v11  ;;  %v611_v48 = vsel %vm445_vm2, %v608_v29, %v610_v37  ;;  %v626_v36 = vsel %vm463_vm3, %v623_v6, %v625_v39 }
  0xda   : > { %v471_v49 = vadd.f32 %v466_v12, %v453_v41  ;;  %v599_v22 = vadd.f32 %v594_v46, %v584_v40  ;;  %v476_v50 = vsub.f32 %v474_v43, %v472_v42  ;;  %v609_v51 = vsel %vm445_vm2, %v607_v38, %v608_v29 }
  0xdb   : > { %v615_v52 = vadd.f32 %v611_v48, %v600_v47  ;;  %v624_v58 = vsel %vm463_vm3, %v622_v45, %v623_v6 }
  0xdc   : > { %v475_v53 = vsub.f32 %v473_v35, %v471_v49  ;;  %v614_v55 = vadd.f32 %v609_v51, %v599_v22  ;;  %v480_v61 = vmul.f32 %v478_v54, %v476_v50 }
  0xdd   : > { %v630_v23 = vadd.f32 %v626_v36, %v615_v52 }
  0xde   : > { %v629_v37 = vadd.f32 %v624_v58, %v614_v55  ;;  %v479_v63 = vmul.f32 %v477_v57, %v475_v53  ;;  %v482_v10 = vmul.f32 %v480_v61, %v480_v61 }
  0xdf   : > { %v635_v62 = vsub.f32 %v802_v56, %v630_v23 }
  0xe0   : > { %v634_v39 = vsub.f32 %v801_v59, %v629_v37  ;;  %v481_v4 = vmul.f32 %v479_v63, %v479_v63 }
  0xe1   : > { %v640_v0 = vmul.f32 %v804_v60, %v635_v62 }
  0xe2   : > { %v639_v2 = vmul.f32 %v803_v25, %v634_v39 }
  0xe3   : > { %v642_v9 = vmul.f32 %v640_v0, %v640_v0 }
  0xe4   : > { %v641_v7 = vmul.f32 %v639_v2, %v639_v2 }
  0xe5   : > { %v644_v1 = vadd.f32 %v642_v9, %v482_v10 }
  0xe6   : > { %v643_v13 = vadd.f32 %v641_v7, %v481_v4 }
  0xe7   : > { %v647_v3 = vsel %vm645_vm4, %v644_v1, 0.0 }
  0xe8   : > { %v646_v14 = vsel %vm645_vm4, %v643_v13, 0.0 }
  0xe9   : > { %v648_v8 = vadd.f32 %v647_v3, %v646_v14 }
  0xeb   : > { %649 = vadd.xlane.f32.xlu0 %v648_v8 }
 0x15e   : > { %v650_v16 = vpop.xlane.xlu0 %649 }
 0x15f   : > { %v651_v17 = vrot.slane %v650_v16, 4 }
 0x161   : > { %v652_v18 = vadd.f32 %v651_v17, %v650_v16 }
 0x163   : > { %v653_v19 = vrot.slane %v652_v18, 2 }
 0x165   : > { %v654_v20 = vadd.f32 %v653_v19, %v652_v18 }
 0x167   : > { %v655_v21 = vrot.slane %v654_v20, 1 }
 0x169   : > { %v656_v24 = vadd.f32 %v655_v21, %v654_v20 }
 0x16b   : > { %810 = vpush %v656_v24 }
 0x19c   : > { %s811_s15 = spop %810 }
 0x19d   : > { %v658_v26 = vstv %s811_s15 }
 0x19e   : > { %659 = vst [vmem:[%s282_s11] sm:$0x1] %v658_v26 }
 0x19f   : > { %933 = shalt.err (!%p930_p8)
}
 0x1a0   : > { %820 = dma.vmem_to_hbm [thread:$0]  (%p1052_p5), %s672_s12, 16, %s674_s14, %s661_s16  }
 0x1a1 PF: > { %p837_p9 = scmp.ge.s32.totalorder %s976_s21, 2  ;;  %s685_s7 = sand.u32 1, %s964_s18  }
 0x1a2   : > { %s686_s13 = scalar_lea.sflag [#allocation3], %s685_s7 }
 0x1a3   : > { %p830_p10 = pnand %p837_p9, %p1056_p6 }
 0x1a5   : > { %p831_p11 = pneg %p830_p10 }
 0x1a7   : > { %959 = dma.done.wait (%p831_p11), %s686_s13, 16  }
 0x1a8   : > { %961 = vsyncadd (%p831_p11), %s686_s13, 4294967280  ;;  %p17_p12 = scmp.ge.s32.totalorder %s1039_s24, 4   ;;  %s1257_s18 = smov %s968_s19 }
 0x1a9   : > { %s1258_s19 = smov %s972_s20  ;;  %s1259_s20 = smov %s1050_s27 }
 0x1aa   : > { %s1260_s21 = smov %s1039_s24  ;;  %19 = sbr.rel (!%p17_p12) target bundleno = 5 (0x5), region = 93 }
 0x1af   :  { %691 = vsyncpa [#allocation3], 1 }
 0x1b0   :  { %693 = vsyncpa [#allocation3 + $0x1], 1 }
 0x1b1   :  { %694 = vsyncpa [#allocation4], 1 }
 0x1b2   :  { %696 = vsyncpa [#allocation4 + $0x1], 1 }
 0x1b3   :  { %697 = vsyncpa [#allocation6], 1 }

</bundles_post_ra>
